<compile_context>
chip_gen: v7x
topology: tpu7x:2x2x1
jax: 0.10.0
libtpu: 0.0.40
codegen_flags: <defaults>
</compile_context>

<pallas_src>
import functools

import jax
import jax.numpy as jnp
from jax.experimental import pallas as pl
from jax.experimental.pallas import tpu as pltpu


def conv1d_gn_mish_kernel(xp_ref, w_ref, params_ref, grp_ref, grpT_ref, o_ref,
                          *, n_groups, eps, k_taps, t_out, rows):
    # xp_ref:     (Bb, C_in, T_pad)  zero-padded input rows for this grid step
    # w_ref:      (K, C_out, C_in)   per-tap conv weights
    # params_ref: (3, C_out, 1)      [conv bias; GN gamma; GN beta]
    # grp_ref:    (G, C_out)         constant 0/1 group-assignment matrix
    # grpT_ref:   (C_out, G)         its transpose
    # o_ref:      (Bb, C_out, T_out)
    c_out = o_ref.shape[1]
    inv_n = 1.0 / float((c_out // n_groups) * t_out)

    w = w_ref[...]                                          # (K, C_out, C_in)
    bias = params_ref[0]                                    # (C_out, 1)
    gamma = params_ref[1]
    beta = params_ref[2]
    grp = grp_ref[...]                                      # (G, C_out)
    grpT = grpT_ref[...]                                    # (C_out, G)

    @pl.loop(0, rows)                                       # bounds live ranges per row
    def _(row):
        xr = xp_ref[row]                                    # (C_in, T_pad)

        # ---- Conv1d: K static lane-offset taps accumulated on the MXU ----
        acc = jnp.dot(w[0], xr[:, 0:t_out], preferred_element_type=jnp.float32)
        for kk in range(1, k_taps):
            acc = acc + jnp.dot(w[kk], xr[:, kk:kk + t_out],
                                preferred_element_type=jnp.float32)
        acc = acc + bias                                    # (C_out, T_out)

        # ---- GroupNorm per (row, group): shifted two-pass variance ----
        s1 = jnp.sum(acc, axis=1, keepdims=True)            # (C_out, 1)
        mean_g = jnp.dot(grp, s1, preferred_element_type=jnp.float32) * inv_n   # (G, 1)
        mean_c = jnp.dot(grpT, mean_g, preferred_element_type=jnp.float32)      # (C_out, 1)
        cen = acc - mean_c
        s2 = jnp.sum(cen * cen, axis=1, keepdims=True)       # (C_out, 1)
        var_g = jnp.dot(grp, s2, preferred_element_type=jnp.float32) * inv_n    # (G, 1)
        rstd_c = jnp.dot(grpT, jax.lax.rsqrt(var_g + eps),
                         preferred_element_type=jnp.float32)                    # (C_out, 1)
        y = cen * (gamma * rstd_c) + beta                    # scale/shift broadcast on lanes

        # ---- Mish: y * tanh(softplus(y)) = y * m/(m+2), m = e*(e+2) ----
        e = jnp.exp(jnp.minimum(y, 20.0))   # clamp: for y > 20, mish(y) == y in f32
        m = e * (e + 2.0)
        o_ref[row] = (y * (m * pl.reciprocal(m + 2.0, approx=True))).astype(o_ref.dtype)


def _vmem_budgets():
    """(per-step footprint budget, requested vmem_limit_bytes), generation aware."""
    try:
        info = pltpu.get_tpu_info()
        cap = getattr(info, "vmem_capacity_bytes", None) or (64 << 20)
    except Exception:
        cap = 64 << 20                      # assume the smallest (v7x: 64 MiB / TC)
    if cap <= (64 << 20):                   # v7x-class
        return 24 << 20, 48 << 20
    return 44 << 20, 64 << 20               # v5e / v6e (128 MiB physical VMEM)


def _pick_batch_tile(B, C_in, C_out, K, T_pad, T_out, n_groups, budget_bytes):
    """Largest divisor of B whose *true* per-step footprint fits the budget,
    preferring >= 4 (else >= 2) grid steps for pipelining + v7x megacore."""
    f32 = 4
    const_bytes = f32 * (K * C_out * C_in + 3 * C_out + 2 * n_groups * C_out)

    def footprint(bb):
        in_blk = f32 * bb * C_in * T_pad
        out_blk = f32 * bb * C_out * T_out
        temps = 8 * f32 * C_out * T_out            # per-row live f32 temporaries
        # 2x: default double buffering on every operand (incl. grid-invariant ones)
        return 2 * (in_blk + out_blk + const_bytes) + temps

    divisors = [d for d in range(1, B + 1) if B % d == 0]
    fitting = [d for d in divisors if footprint(d) <= budget_bytes] or [1]
    for min_steps in (4, 2, 1):
        cands = [d for d in fitting if B // d >= min_steps]
        if cands:
            return max(cands)
    return 1


def conv1d_block(x, w, b, gamma, beta, *, n_groups=8, eps=1e-5):
    """x: (B, C_in, T).  w: (C_out, C_in, K).  Returns (B, C_out, T_out)."""
    B, C_in, T = x.shape
    C_out, C_in_w, K = w.shape
    assert C_in_w == C_in
    assert C_out % n_groups == 0, "C_out must be divisible by n_groups"
    pad = K // 2
    T_pad = T + 2 * pad
    T_out = T_pad - (K - 1)

    # Host prep is O(|x|) once (padding) + tiny weight/constant reshapes.
    x_pad = jnp.pad(x.astype(jnp.float32), ((0, 0), (0, 0), (pad, pad)))      # (B, C_in, T_pad)
    wt = jnp.transpose(w.astype(jnp.float32), (2, 0, 1))                      # (K, C_out, C_in)
    params = jnp.stack([b, gamma, beta]).astype(jnp.float32).reshape(3, C_out, 1)
    gs = C_out // n_groups
    grp = (jnp.arange(C_out)[None, :] // gs ==
           jnp.arange(n_groups)[:, None]).astype(jnp.float32)                 # (G, C_out)
    grpT = grp.T                                                              # (C_out, G)

    budget, vmem_limit = _vmem_budgets()
    Bb = _pick_batch_tile(B, C_in, C_out, K, T_pad, T_out, n_groups, budget)

    kernel = functools.partial(conv1d_gn_mish_kernel, n_groups=n_groups, eps=eps,
                               k_taps=K, t_out=T_out, rows=Bb)

    out = pl.pallas_call(
        kernel,
        out_shape=jax.ShapeDtypeStruct((B, C_out, T_out), jnp.float32),
        grid=(B // Bb,),
        in_specs=[
            pl.BlockSpec((Bb, C_in, T_pad), lambda i: (i, 0, 0)),
            pl.BlockSpec((K, C_out, C_in), lambda i: (0, 0, 0)),
            pl.BlockSpec((3, C_out, 1), lambda i: (0, 0, 0)),
            pl.BlockSpec((n_groups, C_out), lambda i: (0, 0)),
            pl.BlockSpec((C_out, n_groups), lambda i: (0, 0)),
        ],
        out_specs=pl.BlockSpec((Bb, C_out, T_out), lambda i: (i, 0, 0)),
        compiler_params=pltpu.CompilerParams(
            dimension_semantics=("parallel",),     # batch tiles are independent
            vmem_limit_bytes=vmem_limit),
    )(x_pad, wt, params, grp, grpT)

    return out.astype(x.dtype)


def reference(x, w, b, gamma, beta, *, n_groups=8, eps=1e-5):
    """Pure-JAX reference mirroring nn.Conv1d -> nn.GroupNorm -> nn.Mish."""
    pad = w.shape[2] // 2
    y = jax.lax.conv_general_dilated(
        x, w, window_strides=(1,), padding=[(pad, pad)],
        dimension_numbers=("NCH", "OIH", "NCH"))
    y = y + b[None, :, None]
    B, C, T = y.shape
    yg = y.reshape(B, n_groups, (C // n_groups) * T)
    mean = yg.mean(-1, keepdims=True)
    var = ((yg - mean) ** 2).mean(-1, keepdims=True)
    yn = ((yg - mean) / jnp.sqrt(var + eps)).reshape(B, C, T)
    yn = yn * gamma[None, :, None] + beta[None, :, None]
    return yn * jnp.tanh(jax.nn.softplus(yn))


if __name__ == "__main__":
    # Small shapes consistent with Conv1dBlock(inp_channels=4, out_channels=16,
    # kernel_size=3, n_groups=8).
    B, C_in, C_out, T, K, G = 2, 4, 16, 16, 3, 8

    key = jax.random.PRNGKey(0)
    kx, kw, kb = jax.random.split(key, 3)
    x = jax.random.normal(kx, (B, C_in, T), dtype=jnp.float32)
    w = 0.2 * jax.random.normal(kw, (C_out, C_in, K), dtype=jnp.float32)
    b = 0.1 * jax.random.normal(kb, (C_out,), dtype=jnp.float32)
    gamma = jnp.ones((C_out,), dtype=jnp.float32)   # GroupNorm default weight
    beta = jnp.zeros((C_out,), dtype=jnp.float32)   # GroupNorm default bias

    out = conv1d_block(x, w, b, gamma, beta, n_groups=G)
    out = jax.block_until_ready(out)

    ref = jax.block_until_ready(reference(x, w, b, gamma, beta, n_groups=G))
    assert out.shape == (B, C_out, T)
    # Tolerance reflects the EUP approximate reciprocal in the Mish tail
    # (exact-path error is ~1e-6; the approx recip adds ~1e-3 relative).
    assert jnp.allclose(out, ref, atol=5e-3, rtol=5e-3), \
        f"max abs err {jnp.max(jnp.abs(out - ref))}"

    print("KERNEL_OK")
</pallas_src>

<mosaic_0001>
module attributes {stable_mosaic.version = 11 : i64} {
  func.func @conv1d_gn_mish_kernel(%arg0: i32, %arg1: memref<1x4x18xf32, #tpu.memory_space<vmem>>, %arg2: memref<3x16x4xf32, #tpu.memory_space<vmem>>, %arg3: memref<3x16x1xf32, #tpu.memory_space<vmem>>, %arg4: memref<8x16xf32, #tpu.memory_space<vmem>>, %arg5: memref<16x8xf32, #tpu.memory_space<vmem>>, %arg6: memref<1x16x16xf32, #tpu.memory_space<vmem>>) attributes {dimension_semantics = [#tpu.dimension_semantics<parallel>], iteration_bounds = array<i64: 2>, scalar_prefetch = 0 : i64, scratch_operands = 0 : i64, tpu.core_type = #tpu.core_type<tc>, window_params = [{transform_indices = @transform_0, window_bounds = array<i64: 1, 4, 18>}, {pipeline_mode = #tpu.pipeline_mode<synchronous>, transform_indices = @transform_1, window_bounds = array<i64: 3, 16, 4>}, {pipeline_mode = #tpu.pipeline_mode<synchronous>, transform_indices = @transform_2, window_bounds = array<i64: 3, 16, 1>}, {pipeline_mode = #tpu.pipeline_mode<synchronous>, transform_indices = @transform_3, window_bounds = array<i64: 8, 16>}, {pipeline_mode = #tpu.pipeline_mode<synchronous>, transform_indices = @transform_4, window_bounds = array<i64: 16, 8>}, {transform_indices = @transform_5, window_bounds = array<i64: 1, 16, 16>}]} {
    %c0 = arith.constant 0 : index
    %c0_0 = arith.constant 0 : index
    %c0_1 = arith.constant 0 : index
    %0 = vector.load %arg2[%c0, %c0_0, %c0_1] : memref<3x16x4xf32, #tpu.memory_space<vmem>>, vector<3x16x4xf32>
    %c0_2 = arith.constant 0 : index
    %c0_3 = arith.constant 0 : index
    %c0_4 = arith.constant 0 : index
    %1 = vector.load %arg3[%c0_2, %c0_3, %c0_4] : memref<3x16x1xf32, #tpu.memory_space<vmem>>, vector<1x16x1xf32>
    %2 = vector.shape_cast %1 : vector<1x16x1xf32> to vector<16x1xf32>
    %c1 = arith.constant 1 : index
    %c0_5 = arith.constant 0 : index
    %c0_6 = arith.constant 0 : index
    %3 = vector.load %arg3[%c1, %c0_5, %c0_6] : memref<3x16x1xf32, #tpu.memory_space<vmem>>, vector<1x16x1xf32>
    %4 = vector.shape_cast %3 : vector<1x16x1xf32> to vector<16x1xf32>
    %c2 = arith.constant 2 : index
    %c0_7 = arith.constant 0 : index
    %c0_8 = arith.constant 0 : index
    %5 = vector.load %arg3[%c2, %c0_7, %c0_8] : memref<3x16x1xf32, #tpu.memory_space<vmem>>, vector<1x16x1xf32>
    %6 = vector.shape_cast %5 : vector<1x16x1xf32> to vector<16x1xf32>
    %c0_9 = arith.constant 0 : index
    %c0_10 = arith.constant 0 : index
    %7 = vector.load %arg4[%c0_9, %c0_10] : memref<8x16xf32, #tpu.memory_space<vmem>>, vector<8x16xf32>
    %c0_11 = arith.constant 0 : index
    %c0_12 = arith.constant 0 : index
    %8 = vector.load %arg5[%c0_11, %c0_12] : memref<16x8xf32, #tpu.memory_space<vmem>>, vector<16x8xf32>
    %c0_i32 = arith.constant 0 : i32
    %c1_i32 = arith.constant 1 : i32
    %9 = arith.muli %c0_i32, %c1_i32 : i32
    %c0_i32_13 = arith.constant 0 : i32
    %10 = arith.addi %c0_i32_13, %9 : i32
    %11 = arith.index_cast %10 : i32 to index
    %c0_14 = arith.constant 0 : index
    %c0_15 = arith.constant 0 : index
    %12 = vector.load %arg1[%11, %c0_14, %c0_15] : memref<1x4x18xf32, #tpu.memory_space<vmem>>, vector<1x4x18xf32>
    %13 = vector.shape_cast %12 : vector<1x4x18xf32> to vector<4x18xf32>
    %14 = vector.extract_strided_slice %0 {offsets = [0, 0, 0], sizes = [1, 16, 4], strides = [1, 1, 1]} : vector<3x16x4xf32> to vector<1x16x4xf32>
    %15 = vector.shape_cast %14 : vector<1x16x4xf32> to vector<16x4xf32>
    %16 = vector.extract_strided_slice %13 {offsets = [0, 0], sizes = [4, 16], strides = [1, 1]} : vector<4x18xf32> to vector<4x16xf32>
    %cst = arith.constant dense<0.000000e+00> : vector<16x16xf32>
    %17 = tpu.matmul %15, %16, %cst {dimension_numbers = #tpu.dot_dimension_numbers<[1], [0], [0], [1], [0, 0, 1, 1], [], []>} : vector<16x4xf32>, vector<4x16xf32>, vector<16x16xf32> -> vector<16x16xf32>
    %18 = vector.extract_strided_slice %0 {offsets = [1, 0, 0], sizes = [1, 16, 4], strides = [1, 1, 1]} : vector<3x16x4xf32> to vector<1x16x4xf32>
    %19 = vector.shape_cast %18 : vector<1x16x4xf32> to vector<16x4xf32>
    %20 = vector.extract_strided_slice %13 {offsets = [0, 1], sizes = [4, 16], strides = [1, 1]} : vector<4x18xf32> to vector<4x16xf32>
    %cst_16 = arith.constant dense<0.000000e+00> : vector<16x16xf32>
    %21 = tpu.matmul %19, %20, %cst_16 {dimension_numbers = #tpu.dot_dimension_numbers<[1], [0], [0], [1], [0, 0, 1, 1], [], []>} : vector<16x4xf32>, vector<4x16xf32>, vector<16x16xf32> -> vector<16x16xf32>
    %22 = arith.addf %17, %21 : vector<16x16xf32>
    %23 = vector.extract_strided_slice %0 {offsets = [2, 0, 0], sizes = [1, 16, 4], strides = [1, 1, 1]} : vector<3x16x4xf32> to vector<1x16x4xf32>
    %24 = vector.shape_cast %23 : vector<1x16x4xf32> to vector<16x4xf32>
    %25 = vector.extract_strided_slice %13 {offsets = [0, 2], sizes = [4, 16], strides = [1, 1]} : vector<4x18xf32> to vector<4x16xf32>
    %cst_17 = arith.constant dense<0.000000e+00> : vector<16x16xf32>
    %26 = tpu.matmul %24, %25, %cst_17 {dimension_numbers = #tpu.dot_dimension_numbers<[1], [0], [0], [1], [0, 0, 1, 1], [], []>} : vector<16x4xf32>, vector<4x16xf32>, vector<16x16xf32> -> vector<16x16xf32>
    %27 = arith.addf %22, %26 : vector<16x16xf32>
    %28 = vector.broadcast %2 : vector<16x1xf32> to vector<16x16xf32>
    %29 = arith.addf %27, %28 : vector<16x16xf32>
    %cst_18 = arith.constant dense<0.000000e+00> : vector<16xf32>
    %30 = vector.multi_reduction <add>, %29, %cst_18 [1] : vector<16x16xf32> to vector<16xf32>
    %31 = vector.shape_cast %30 : vector<16xf32> to vector<16x1xf32>
    %cst_19 = arith.constant dense<0.000000e+00> : vector<8x1xf32>
    %32 = tpu.matmul %7, %31, %cst_19 {dimension_numbers = #tpu.dot_dimension_numbers<[1], [0], [0], [1], [0, 0, 1, 1], [], []>} : vector<8x16xf32>, vector<16x1xf32>, vector<8x1xf32> -> vector<8x1xf32>
    %cst_20 = arith.constant 3.125000e-02 : f32
    %33 = vector.broadcast %cst_20 : f32 to vector<8x1xf32>
    %34 = arith.mulf %32, %33 : vector<8x1xf32>
    %cst_21 = arith.constant dense<0.000000e+00> : vector<16x1xf32>
    %35 = tpu.matmul %8, %34, %cst_21 {dimension_numbers = #tpu.dot_dimension_numbers<[1], [0], [0], [1], [0, 0, 1, 1], [], []>} : vector<16x8xf32>, vector<8x1xf32>, vector<16x1xf32> -> vector<16x1xf32>
    %36 = vector.broadcast %35 : vector<16x1xf32> to vector<16x16xf32>
    %37 = arith.subf %29, %36 : vector<16x16xf32>
    %38 = arith.mulf %37, %37 : vector<16x16xf32>
    %cst_22 = arith.constant dense<0.000000e+00> : vector<16xf32>
    %39 = vector.multi_reduction <add>, %38, %cst_22 [1] : vector<16x16xf32> to vector<16xf32>
    %40 = vector.shape_cast %39 : vector<16xf32> to vector<16x1xf32>
    %cst_23 = arith.constant dense<0.000000e+00> : vector<8x1xf32>
    %41 = tpu.matmul %7, %40, %cst_23 {dimension_numbers = #tpu.dot_dimension_numbers<[1], [0], [0], [1], [0, 0, 1, 1], [], []>} : vector<8x16xf32>, vector<16x1xf32>, vector<8x1xf32> -> vector<8x1xf32>
    %cst_24 = arith.constant 3.125000e-02 : f32
    %42 = vector.broadcast %cst_24 : f32 to vector<8x1xf32>
    %43 = arith.mulf %41, %42 : vector<8x1xf32>
    %cst_25 = arith.constant 9.99999974E-6 : f32
    %44 = vector.broadcast %cst_25 : f32 to vector<8x1xf32>
    %45 = arith.addf %43, %44 : vector<8x1xf32>
    %46 = math.rsqrt %45 : vector<8x1xf32>
    %cst_26 = arith.constant dense<0.000000e+00> : vector<16x1xf32>
    %47 = tpu.matmul %8, %46, %cst_26 {dimension_numbers = #tpu.dot_dimension_numbers<[1], [0], [0], [1], [0, 0, 1, 1], [], []>} : vector<16x8xf32>, vector<8x1xf32>, vector<16x1xf32> -> vector<16x1xf32>
    %48 = arith.mulf %4, %47 : vector<16x1xf32>
    %49 = vector.broadcast %48 : vector<16x1xf32> to vector<16x16xf32>
    %50 = arith.mulf %37, %49 : vector<16x16xf32>
    %51 = vector.broadcast %6 : vector<16x1xf32> to vector<16x16xf32>
    %52 = arith.addf %50, %51 : vector<16x16xf32>
    %cst_27 = arith.constant 2.000000e+01 : f32
    %53 = vector.broadcast %cst_27 : f32 to vector<16x16xf32>
    %54 = arith.minimumf %52, %53 : vector<16x16xf32>
    %55 = math.exp %54 : vector<16x16xf32>
    %cst_28 = arith.constant 2.000000e+00 : f32
    %56 = vector.broadcast %cst_28 : f32 to vector<16x16xf32>
    %57 = arith.addf %55, %56 : vector<16x16xf32>
    %58 = arith.mulf %55, %57 : vector<16x16xf32>
    %cst_29 = arith.constant 2.000000e+00 : f32
    %59 = vector.broadcast %cst_29 : f32 to vector<16x16xf32>
    %60 = arith.addf %58, %59 : vector<16x16xf32>
    %61 = tpu.reciprocal %60 {approx = true} : vector<16x16xf32> -> vector<16x16xf32>
    %62 = arith.mulf %58, %61 : vector<16x16xf32>
    %63 = arith.mulf %52, %62 : vector<16x16xf32>
    %64 = arith.index_cast %10 : i32 to index
    %c0_30 = arith.constant 0 : index
    %c0_31 = arith.constant 0 : index
    %65 = vector.load %arg6[%64, %c0_30, %c0_31] : memref<1x16x16xf32, #tpu.memory_space<vmem>>, vector<1x16x16xf32>
    %66 = vector.shape_cast %65 : vector<1x16x16xf32> to vector<16x16xf32>
    %67 = vector.shape_cast %63 : vector<16x16xf32> to vector<1x16x16xf32>
    tpu.vector_store %arg6[%64, %c0_30, %c0_31], %67 {strides = array<i32>} : memref<1x16x16xf32, #tpu.memory_space<vmem>>, vector<1x16x16xf32>,
    %c1_i32_32 = arith.constant 1 : i32
    return
  }
  func.func @transform_0(%arg0: i32) -> (i32, i32, i32) {
    %c0_i32 = arith.constant 0 : i32
    %c0_i32_0 = arith.constant 0 : i32
    %c0_i32_1 = arith.constant 0 : i32
    return %arg0, %c0_i32, %c0_i32_0 : i32, i32, i32
  }
  func.func @transform_1(%arg0: i32) -> (i32, i32, i32) {
    %c0_i32 = arith.constant 0 : i32
    %c0_i32_0 = arith.constant 0 : i32
    %c0_i32_1 = arith.constant 0 : i32
    %c0_i32_2 = arith.constant 0 : i32
    return %c0_i32, %c0_i32_0, %c0_i32_1 : i32, i32, i32
  }
  func.func @transform_2(%arg0: i32) -> (i32, i32, i32) {
    %c0_i32 = arith.constant 0 : i32
    %c0_i32_0 = arith.constant 0 : i32
    %c0_i32_1 = arith.constant 0 : i32
    %c0_i32_2 = arith.constant 0 : i32
    return %c0_i32, %c0_i32_0, %c0_i32_1 : i32, i32, i32
  }
  func.func @transform_3(%arg0: i32) -> (i32, i32) {
    %c0_i32 = arith.constant 0 : i32
    %c0_i32_0 = arith.constant 0 : i32
    %c0_i32_1 = arith.constant 0 : i32
    return %c0_i32, %c0_i32_0 : i32, i32
  }
  func.func @transform_4(%arg0: i32) -> (i32, i32) {
    %c0_i32 = arith.constant 0 : i32
    %c0_i32_0 = arith.constant 0 : i32
    %c0_i32_1 = arith.constant 0 : i32
    return %c0_i32, %c0_i32_0 : i32, i32
  }
  func.func @transform_5(%arg0: i32) -> (i32, i32, i32) {
    %c0_i32 = arith.constant 0 : i32
    %c0_i32_0 = arith.constant 0 : i32
    %c0_i32_1 = arith.constant 0 : i32
    return %arg0, %c0_i32, %c0_i32_0 : i32, i32, i32
  }
}

</mosaic_0001>

<bundles_post_ra>
// kernel: tpu_custom_call.1
= control target key start
LH: loop header
LB: loop body
LE: loop exit
PB: predicated region body
PF: predicated region fallthrough
CT: control target
= control target key end

     0   :  { %10 = vsyncpa [#allocation3], 0  ;;  %s1392_s0 = inlined_call_operand.vmem [shape: f32[2,4,18], index: 0, kind: input, shape index: {}]   ;;  %s1393_s1 = inlined_call_operand.vmem [shape: f32[3,16,4], index: 1, kind: input, shape index: {}]   ;;  %s1394_s2 = inlined_call_operand.vmem [shape: f32[3,16,1], index: 2, kind: input, shape index: {}]   ;;  %s1395_s3 = inlined_call_operand.vmem [shape: f32[8,16], index: 3, kind: input, shape index: {}]   ;;  %s1396_s4 = inlined_call_operand.vmem [shape: f32[16,8], index: 4, kind: input, shape index: {}]   ;;  %s1397_s5 = inlined_call_operand.hbm [shape: f32[2,16,16], index: 5, kind: output, shape index: {}]  }
   0x1   :  { %12 = vsyncpa [#allocation3 + $0x1], 0  ;;  %s1224_s18 = smov 0   ;;  %s1226_s19 = smov 0  }
   0x2   :  { %s1228_s20 = smov 0   ;;  %s1230_s21 = smov 0  }
   0x3 LB: > { %s1245_s22 = sadd.s32 4294967295, %s1183_s21   ;;  %s961_s23 = sadd.s32 4294967294, %s1183_s21   ;;  %s1183_s21 = sphi %s1230_s21, %s1403_s21   ;;  %s1179_s20 = sphi %s1228_s20, %s1402_s20   ;;  %s1175_s19 = sphi %s1226_s19, %s1401_s19   ;;  %s1171_s18 = sphi %s1224_s18, %s1400_s18  }
   0x4   : > { %s1249_s24 = sadd.s32 1, %s1183_s21   ;;  %s135_s25 = sadd.s32 1, %s1179_s20 }
   0x5   : > { %s132_s26 = ssub.s32 %s1183_s21, %s1249_s24  ;;  %p145_p0 = scmp.ne.s32.totalorder %s1179_s20, %s1175_s19 }
   0x6   : > { %p133_p1 = scmp.eq.s32.totalorder %s132_s26, 0  ;;  %p146_p2 = scmp.eq.s32.totalorder %s1245_s22, 1 }
   0x7   : > { %p151_p3 = scmp.ne.s32.totalorder %s1175_s19, %s1171_s18  ;;  %p152_p4 = scmp.eq.s32.totalorder %s961_s23, 1 }
   0x8   : > { %s1260_s27 = scalar_select %p133_p1, %s1179_s20, %s135_s25  }
   0x9   : > { %p1262_p5 = por %p146_p2, %p145_p0  ;;  %p1266_p6 = por %p152_p4, %p151_p3 }
   0xa   : > { %p964_p7 = scmp.ge.s32.totalorder %s1183_s21, 1  ;;  %p189_p8 = scmp.lt.s32.totalorder %s1183_s21, 3 }
   0xc   : > { %p190_p9 = pnand %p964_p7, %p189_p8 }
   0xd   : > { %p216_p10 = scmp.lt.s32.totalorder (!%p190_p9), %s1245_s22, 1  ;;  %v222_v0 = vld [vmem:[%s1393_s1 + $0x10] sm:$0xff] (!%p190_p9)  ;;  %vm241_vm0 = vcmask (!%p190_p9), 31744   ;;  %s1185_s12 = smov (!%p190_p9), 127   ;;  %v226_v2 = vld [vmem:[%s1394_s2] sm:$0xff] (!%p190_p9)  ;;  %v1187_v3 = vmov (!%p190_p9), 0  }
   0xe   : > { %193 = sbr.rel (%p190_p9) target bundleno = 1860 (0x744), region = 40  ;;  %1015 = vmatprep.mubr.msk.f32.mxu0 (!%p190_p9), %vm241_vm0, %v222_v0  ;;  %s1186_s13 = smov (!%p190_p9), 126   ;;  %1109 = vset.pattern.permute.xlu1 (!%p190_p9), %v1187_v3  ;;  %v227_v4 = vld [vmem:[%s1394_s2 + $0x8] sm:$0xff] (!%p190_p9)  ;;  %vm248_vm1 = vcmask (!%p190_p9), 1043456   ;;  %v223_v6 = vld [vmem:[%s1393_s1 + $0x18] sm:$0xff] (!%p190_p9)  ;;  %v220_v7 = vld [vmem:[%s1393_s1] sm:$0xff] (!%p190_p9) }
   0xf   : > { %1110 = vset.pattern.permute.xlu0 (!%p190_p9), %v1187_v3  ;;  %498 = vperm.xlu1 (!%p190_p9), %1109, %v226_v2   ;;  %v221_v9 = vld [vmem:[%s1393_s1 + $0x8] sm:$0xff] (!%p190_p9)  ;;  %v224_v10 = vld [vmem:[%s1393_s1 + $0x20] sm:$0xff] (!%p190_p9)  ;;  %vm508_vm2 = vcmask (!%p190_p9), 130048   ;;  %v1188_v20 = vmov (!%p190_p9), 0.0|0.0   ;;  %vm1189_vm3 = vmmov (!%p190_p9), 0   ;;  %v1190_v21 = vmov (!%p190_p9), 0.0  }
  0x10   : > { %v225_v11 = vld [vmem:[%s1393_s1 + $0x28] sm:$0xff] (!%p190_p9)  ;;  %1052 = vmatprep.subr.bf16.mxu1 (!%p190_p9), %v1188_v20  ;;  %1032 = vmatprep.mubr.msk.f32.mxu1 (!%p190_p9), %vm1189_vm3, %v1190_v21  ;;  %v234_v25 = vld [vmem:[%s1395_s3] sm:$0xff] (!%p190_p9)  ;;  %vm589_vm4 = vcmask (!%p190_p9), 64512   ;;  %v968_v50 = vld [vmem:[%s1394_s2 + $0x18] sm:$0xff] (!%p190_p9)  ;;  %s213_s10 = sand.u32 (!%p190_p9), 1, %s1175_s19   ;;  %s1191_s25 = smov (!%p190_p9), [#allocation2]  }
  0x11   : > { %v235_v26 = vld [vmem:[%s1396_s4] sm:$0xff] (!%p190_p9)  ;;  %v236_v30 = vld [vmem:[%s1396_s4 + $0x8] sm:$0xff] (!%p190_p9)  ;;  %v967_v51 = vld [vmem:[%s1394_s2 + $0x10] sm:$0xff] (!%p190_p9)  ;;  %s1125_s26 = sshll.u32 (!%p190_p9), %s1191_s25, 4  ;;  %s1126_s26 = int_to_ptr.vmem [resolvable:$false] %s1125_s26 }
  0x12   : > { %v969_v41 = vld [vmem:[%s1394_s2 + $0x20] sm:$0xff] (!%p190_p9)  ;;  %v970_v56 = vld [vmem:[%s1394_s2 + $0x28] sm:$0xff] (!%p190_p9)  ;;  %s1127_s30 = scalar_lea.vmem (!%p190_p9), %s1126_s26, 512 }
  0x13   : > { %503 = vperm.xlu1 (!%p190_p9), %1109, %v227_v4  }
  0x15   : > { %s217_s7 = scalar_select %p216_p10, %s1245_s22, 1 }
  0x17   : > { %s966_s8 = sshll.u32 %s217_s7, 2 }
  0x18   : > { %s219_s11 = scalar_lea.vmem %s1392_s0, %s966_s8 }
  0x19   : > { %v237_v1 = vld [vmem:[%s219_s11] sm:$0xf]  ;;  %s965_s11 = sshll.u32 %s213_s10, 4 }
  0x1a   : > { %239 = vrot.lane.b32.xlu0 %v237_v1, %s1185_s12  ;;  %s991_s12 = sshll.u32 %s1245_s22, 8  ;;  %s1351_s22 = scalar_lea.sflag [#allocation3], %s213_s10 }
  0x1b   : > { %s1345_s17 = scalar_lea.hbm %s1397_s5, %s991_s12 }
  0x1e   : > { %409 = vrot.lane.b32.xlu0 %v237_v1, %s1186_s13  ;;  %s215_s13 = scalar_lea.vmem [#allocation2], %s965_s11 }
  0x1f   : > { %s899_s14 = sshll.u32 %s215_s13, 4  ;;  %s1347_s14 = int_to_ptr.vmem [resolvable:$true] %s899_s14 }
  0x20   : > { %s1121_s23 = scalar_lea.vmem %s1347_s14, 256  ;;  %p1128_p0 = scmp.lt.s32.totalorder %s1347_s14, %s1126_s26 }
  0x21   : > { %p1122_p11 = scmp.ne.s32.totalorder %s1347_s14, %s1121_s23  ;;  %p1129_p1 = scmp.lt.s32.totalorder %s1127_s30, %s1121_s23 }
  0x23   : > { %p1123_p12 = pnand %p1122_p11, %p1262_p5  ;;  %p1130_p2 = por %p1129_p1, %p1128_p0 }
  0x25   : > { %p1124_p13 = pneg %p1123_p12 }
  0x27   : > { %p1131_p3 = pnand %p1130_p2, %p1124_p13 }
  0x8c   : > { %v240_v5 = vpop.permute.xlu0 %239 }
  0x8d   : > { %1013 = vmatprep.subr.msk.mxu0 %vm248_vm1, %v240_v5 }
  0x8e   : > { %1014 = vmatpush3.msk.msra.mxu0 %vm248_vm1, %v240_v5  ;;  %v499_v12 = vpop.permute.xlu1 %498 }
  0x8f   : > { %1016 = vmatmul.mubr.msk.f32.vlgmr.msra.gmra.mrb[0].mxu0 %vm241_vm0, %v223_v6  ;;  %1018 = vmatprep.subr.msk.mxu0 %vm248_vm1, %v237_v1 }
  0x90   : > { %1019 = vmatpush3.msk.msra.mxu0 %vm248_vm1, %v237_v1  ;;  %1020 = vmatprep.mubr.msk.f32.mxu0 %vm241_vm0, %v220_v7  ;;  %v410_v8 = vpop.permute.xlu0 %409 }
  0x91   : > { %1023 = vmatprep.subr.msk.mxu0 %vm248_vm1, %v410_v8 }
  0x92   : > { %v504_v13 = vpop.permute.xlu1 %503 }
  0x97   : > { %1021 = vmatmul.mubr.msk.f32.vlgmr.msra.gmra.mrb[0].mxu0 %vm241_vm0, %v221_v9 }
  0x98   : > { %1024 = vmatpush3.msk.msra.mxu0 %vm248_vm1, %v410_v8  ;;  %1025 = vmatprep.mubr.msk.f32.mxu0 %vm241_vm0, %v224_v10 }
  0x9f   : > { %1026 = vmatmul.mubr.msk.f32.vlgmr.msra.gmra.mrb[0].mxu0 %vm241_vm0, %v225_v11 }
  0xa0   : > { %1049 = vmatprep.mubr.msk.f32.mxu0 %vm589_vm4, %v235_v26 }
 0x172   : > { %v1027_v14 = vpop.f32.mrb[0].mxu0 }
 0x173   : > { %v507_v15 = vadd.f32 %v1027_v14, %v504_v13  ;;  %v485_v16 = vpop.f32.mrb[1].mxu0 }
 0x174   : > { %v506_v17 = vadd.f32 %v499_v12, %v485_v16 }
 0x175   : > { %v512_v18 = vsel %vm508_vm2, %v507_v15, 0.0 }
 0x176   : > { %513 = vadd.xlane.f32.xlu1 %v512_v18  ;;  %v509_v19 = vsel %vm508_vm2, %v506_v17, 0.0 }
 0x177   : > { %510 = vadd.xlane.f32.xlu0 %v509_v19 }
 0x203   : > { %v514_v22 = vpop.xlane.xlu1 %513 }
 0x204   : > { %v511_v23 = vpop.xlane.xlu0 %510 }
 0x205   : > { %v1053_v24 = vpack.c.bf16 %v514_v22, %v511_v23 }
 0x207   : > { %1054 = vmatpush3.bf16.msra.mxu1 %v1053_v24 }
 0x20a   : > { %1033 = vmatmul.mubr.msk.f32.vlgmr.msra.gmra.mrb[0].mxu1 %vm508_vm2, %v234_v25 }
 0x20b   : > { %1037 = vmatprep.mubr.msk.f32.mxu1 %vm589_vm4, %v235_v26 }
 0x2dd   : > { %v584_v27 = vpop.f32.mrb[0].mxu1 }
 0x2de   : > { %v588_v28 = vmul.f32 0.03125, %v584_v27  ;;  %v1034_v29 = vpop.f32.mrb[1].mxu1 }
 0x2e0   : > { %1035 = vmatprep.subr.mxu1 %v588_v28 }
 0x2e1   : > { %1036 = vmatpush3.msra.mxu1 %v588_v28 }
 0x2e2   : > { %1038 = vmatmul.mubr.msk.f32.vlgmr.msra.gmra.mrb[2].mxu1 %vm589_vm4, %v236_v30  ;;  %1055 = vmatprep.subr.bf16.mxu1 %v1188_v20 }
 0x2e3   : > { %1044 = vmatprep.mubr.msk.f32.mxu1 %vm1189_vm3, %v1190_v21 }
 0x3b5   : > { %v1039_v31 = vpop.f32.mrb[2].mxu1 }
 0x3b6   : > { %678 = vperm.xlu1 %1109, %v1039_v31   ;;  %v662_v32 = vpop.f32.mrb[3].mxu1 }
 0x3b7   : > { %673 = vperm.xlu0 %1110, %v662_v32  }
 0x435   : > { %v679_v33 = vpop.permute.xlu1 %678 }
 0x436   : > { %v682_v34 = vsub.f32 %v507_v15, %v679_v33  ;;  %v674_v35 = vpop.permute.xlu0 %673 }
 0x437   : > { %v681_v36 = vsub.f32 %v506_v17, %v674_v35 }
 0x438   : > { %v684_v37 = vmul.f32 %v682_v34, %v682_v34 }
 0x439   : > { %v683_v38 = vmul.f32 %v681_v36, %v681_v36 }
 0x43a   : > { %v688_v39 = vsel %vm508_vm2, %v684_v37, 0.0 }
 0x43b   : > { %689 = vadd.xlane.f32.xlu0 %v688_v39  ;;  %v685_v40 = vsel %vm508_vm2, %v683_v38, 0.0 }
 0x43c   : > { %686 = vadd.xlane.f32.xlu1 %v685_v40 }
 0x44d   : > { %855 = vperm.xlu1 %1109, %v969_v41  }
 0x4c8   : > { %v690_v42 = vpop.xlane.xlu0 %689 }
 0x4c9   : > { %v687_v43 = vpop.xlane.xlu1 %686 }
 0x4ca   : > { %v1056_v44 = vpack.c.bf16 %v690_v42, %v687_v43 }
 0x4cc   : > { %1057 = vmatpush3.bf16.msra.mxu1 %v1056_v44 }
 0x4cd   : > { %v856_v57 = vpop.permute.xlu1 %855 }
 0x4cf   : > { %1045 = vmatmul.mubr.msk.f32.vlgmr.msra.gmra.mrb[4].mxu1 %vm508_vm2, %v234_v25 }
 0x5a2   : > { %v757_v45 = vpop.f32.mrb[4].mxu1 }
 0x5a3   : > { %v761_v46 = vmul.f32 0.03125, %v757_v45  ;;  %v1046_v47 = vpop.f32.mrb[5].mxu1 }
 0x5a5   : > { %v762_v48 = vadd.f32 1e-05, %v761_v46 }
 0x5a7   : > { %1111 = vrsqrt.f32 %v762_v48 }
 0x5b1   : > { %v1112_v49 = vpop.eup %1111 }
 0x5b2   : > { %1047 = vmatprep.subr.mxu0 %v1112_v49 }
 0x5b3   : > { %1048 = vmatpush3.msra.mxu0 %v1112_v49 }
 0x5b4   : > { %1050 = vmatmul.mubr.msk.f32.vlgmr.msra.gmra.mrb[2].mxu0 %vm589_vm4, %v236_v30 }
 0x687   : > { %v1051_v52 = vpop.f32.mrb[2].mxu0 }
 0x688   : > { %v840_v53 = vmul.f32 %v1051_v52, %v968_v50  ;;  %v830_v54 = vpop.f32.mrb[3].mxu0 }
 0x689   : > { %v839_v55 = vmul.f32 %v967_v51, %v830_v54 }
 0x68a   : > { %848 = vperm.xlu0 %1110, %v840_v53  }
 0x68b   : > { %843 = vperm.xlu1 %1109, %v839_v55  }
 0x68f   : > { %860 = vperm.xlu1 %1109, %v970_v56  }
 0x709   : > { %v849_v58 = vpop.permute.xlu0 %848 }
 0x70a   : > { %v844_v59 = vpop.permute.xlu1 %843  ;;  %v852_v61 = vmul.f32 %v849_v58, %v682_v34 }
 0x70b   : > { %v851_v60 = vmul.f32 %v844_v59, %v681_v36 }
 0x70d   : > { %v863_v62 = vadd.f32 %v856_v57, %v851_v60 }
 0x70e   : > { %v861_v63 = vpop.permute.xlu1 %860 }
 0x70f   : > { %v865_v0 = vmin.f32 %v863_v62, 20.0  ;;  %v864_v1 = vadd.f32 %v861_v63, %v852_v61 }
 0x711   : > { %v867_v2 = vmul.f32 1.442695, %v865_v0  ;;  %v866_v3 = vmin.f32 %v864_v1, 20.0 }
 0x713   : > { %1113 = vpow2.f32 %v867_v2  ;;  %v869_v4 = vmul.f32 1.442695, %v866_v3 }
 0x715   : > { %1115 = vpow2.f32 %v869_v4 }
 0x71d   : > { %v1114_v5 = vpop.eup %1113 }
 0x71e   : > { %v871_v6 = vadd.f32 2.0, %v1114_v5 }
 0x71f   : > { %v1116_v7 = vpop.eup %1115 }
 0x720   : > { %v873_v8 = vmul.f32 %v1114_v5, %v871_v6  ;;  %v872_v9 = vadd.f32 2.0, %v1116_v7 }
 0x722   : > { %v875_v10 = vadd.f32 2.0, %v873_v8  ;;  %v874_v11 = vmul.f32 %v1116_v7, %v872_v9 }
 0x724   : > { %1117 = vrcp.f32 %v875_v10  ;;  %v876_v12 = vadd.f32 2.0, %v874_v11 }
 0x726   : > { %1119 = vrcp.f32 %v876_v12 }
 0x72e   : > { %v1118_v13 = vpop.eup %1117 }
 0x72f   : > { %v879_v14 = vmul.f32 %v1118_v13, %v873_v8 }
 0x730   : > { %v1120_v15 = vpop.eup %1119 }
 0x731   : > { %v881_v16 = vmul.f32 %v879_v14, %v863_v62  ;;  %v880_v17 = vmul.f32 %v1120_v15, %v874_v11 }
 0x733   : > { %883 = vst.msk [vmem:[%s215_s13] sm:$0xff] %vm508_vm2, %v881_v16  ;;  %v882_v18 = vmul.f32 %v880_v17, %v864_v1 }
 0x735   : > { %884 = vst.msk [vmem:[%s215_s13 + $0x8] sm:$0xff] %vm508_vm2, %v882_v18 }
 0x736   : > { %1134 = shalt.err (!%p1131_p3)
}
 0x737   : > { %s1135_s6 = scalar_lea.hbm %s1345_s17, 256  ;;  %s1139_s9 = scalar_lea.hbm %s1397_s5, 512 }
 0x738   : > { %p1136_p4 = scmp.ne.s32.totalorder %s1345_s17, %s1135_s6  ;;  %p1140_p9 = scmp.lt.u32.totalorder %s1345_s17, %s1397_s5 }
 0x739   : > { %p1141_p10 = scmp.lt.u32.totalorder %s1139_s9, %s1135_s6  ;;  %p1143_p12 = scmp.lt.u32.totalorder %s1135_s6, %s1345_s17 }
 0x73a   : > { %p1137_p7 = pnand %p1136_p4, %p1262_p5 }
 0x73b   : > { %p1142_p11 = por %p1141_p10, %p1140_p9 }
 0x73c   : > { %p1138_p8 = pneg %p1137_p7 }
 0x73d   : > { %p1144_p13 = por %p1143_p12, %p1142_p11 }
 0x73f   : > { %p1145_p0 = pnand %p1144_p13, %p1138_p8 }
 0x741   : > { %1148 = shalt.err (!%p1145_p0)
}
 0x742   : > { %s1192_s12 = smov 128   ;;  %s1193_s13 = smov 8  }
 0x743   : > { %1062 = dma.vmem_to_hbm [thread:$0]  (%p1262_p5), %s1347_s14, 256, %s1345_s17, %s1351_s22, %s1192_s12, %s1192_s12, %s1193_s13  }
 0x744 PF: > { %p1068_p1 = scmp.ge.s32.totalorder %s1183_s21, 2  ;;  %s914_s15 = sand.u32 1, %s1171_s18  }
 0x745   : > { %s915_s16 = scalar_lea.sflag [#allocation3], %s914_s15 }
 0x746   : > { %p1065_p2 = pnand %p1068_p1, %p1266_p6 }
 0x748   : > { %1166 = dma.done.wait (!%p1065_p2), %s915_s16, 256  }
 0x749   : > { %1168 = vsyncadd (!%p1065_p2), %s915_s16, 4294967040  ;;  %p15_p3 = scmp.ge.s32.totalorder %s1249_s24, 4   ;;  %s1400_s18 = smov %s1175_s19 }
 0x74a   : > { %s1401_s19 = smov %s1179_s20  ;;  %s1402_s20 = smov %s1260_s27 }
 0x74b   : > { %s1403_s21 = smov %s1249_s24  ;;  %17 = sbr.rel (!%p15_p3) target bundleno = 3 (0x3), region = 77 }
 0x752   :  { %920 = vsyncpa [#allocation3], 1 }
 0x753   :  { %922 = vsyncpa [#allocation3 + $0x1], 1 }

</bundles_post_ra>
